<compile_context>
chip_gen: v7x
topology: tpu7x:2x2x1
jax: 0.10.0
libtpu: 0.0.40
codegen_flags: <defaults>
</compile_context>

<pallas_src>
import functools

import jax
import jax.numpy as jnp
from jax import lax
from jax.experimental import pallas as pl
from jax.experimental.pallas import tpu as pltpu

_NEG = -1e30  # finite "-inf" used to mask padded vocab columns


def _round_up(x, m):
    return (x + m - 1) // m * m


def _vmem_config():
    """Generation-aware (vmem_limit_bytes, double-buffered weight budget).

    v5e/v6e: 128 MiB VMEM -> large weight tiles.  v7x: 64 MiB per TC -> keep
    the conservative budget.  Falls back to the v7x-safe values if the
    hardware query is unavailable.
    """
    vmem_cap = 64 << 20
    try:
        info = pltpu.get_tpu_info()
        vmem_cap = int(getattr(info, "vmem_capacity_bytes", vmem_cap))
    except Exception:
        pass
    if vmem_cap >= (96 << 20):          # v5e / v6e
        return 96 << 20, 48 << 20
    return 32 << 20, 20 << 20           # v7x or unknown


def _pick_tile_v(V, H, dtype_bytes, weight_budget, cap=4096):
    """Largest 128-multiple vocab tile whose double-buffered weight tile fits.

    No divisor requirement on V — the vocab axis is padded to a tile multiple.
    """
    per_col = 2 * H * dtype_bytes            # 2 buffers x one (H,) bf16 column
    t = (weight_budget // per_col) // 128 * 128
    t = max(128, min(t, cap, _round_up(V, 128)))
    return int(t)


# ----------------------------------------------------------------------------
# Fused kernel (all early-exit layers): per-layer logits + max softmax prob.
#   s[b, v]        = sum_h x[l, b, h] * W[l, h, v] + bias[l, v]
#   logits[l,b,:]  = s                (lane-dense f32 writeback each tile)
#   max_prob[l,b]  = 1 / sum_j exp(s_j - max_j)
# grid = (L, V_pad // tile_v); layer axis "parallel" (v7x megacore), vocab axis
# is the sequential online-softmax reduction.
# ----------------------------------------------------------------------------
def _fused_maxprob_logits_kernel(x_ref, w_ref, b_ref, maxprob_ref, logits_ref,
                                 m_sc, l_sc):
    v = pl.program_id(1)

    @pl.when(v == 0)
    def _():
        m_sc[...] = jnp.full_like(m_sc, -jnp.inf)
        l_sc[...] = jnp.zeros_like(l_sc)

    bias = b_ref[0, pl.ds(v, 1), :]                            # (1, tile_v), resident
    s = jnp.dot(x_ref[0], w_ref[0],
                preferred_element_type=jnp.float32) + bias     # (B, tile_v)
    logits_ref[0] = s                                          # lane-dense vst

    m_prev = m_sc[...]
    m_new = jnp.maximum(m_prev, s.max(axis=-1, keepdims=True))
    l_sc[...] = (l_sc[...] * jnp.exp(m_prev - m_new)
                 + jnp.exp(s - m_new).sum(axis=-1, keepdims=True))
    m_sc[...] = m_new

    @pl.when(v == pl.num_programs(1) - 1)
    def _():
        # max softmax prob == 1 / sum_j exp(s_j - max).  Exact divide: this
        # value gates the exit decision (approx reciprocal could flip it).
        maxprob_ref[0] = 1.0 / l_sc[...]


def early_exit_max_probs_and_logits(x_stack, w_t, b_tiled, *, tile_v, V_pad,
                                    vmem_limit):
    """x_stack [L,B,H] bf16, w_t [L,H,V_pad] bf16, b_tiled [L,nvt,tile_v] f32
    -> (max_probs [L,B,1] f32, logits [L,B,V_pad] f32)."""
    L, B, H = x_stack.shape
    n_vt = V_pad // tile_v
    return pl.pallas_call(
        _fused_maxprob_logits_kernel,
        out_shape=(jax.ShapeDtypeStruct((L, B, 1), jnp.float32),
                   jax.ShapeDtypeStruct((L, B, V_pad), jnp.float32)),
        grid=(L, n_vt),
        in_specs=[
            pl.BlockSpec((1, B, H), lambda l, v: (l, 0, 0)),        # last-token acts
            pl.BlockSpec((1, H, tile_v), lambda l, v: (l, 0, v)),   # classifier W tile
            pl.BlockSpec((1, n_vt, tile_v), lambda l, v: (l, 0, 0)),  # full bias row
        ],
        out_specs=(
            pl.BlockSpec((1, B, 1), lambda l, v: (l, 0, 0)),        # max prob (resident)
            pl.BlockSpec((1, B, tile_v), lambda l, v: (l, 0, v)),   # logits slab
        ),
        scratch_shapes=[pltpu.VMEM((B, 1), jnp.float32),            # running max
                        pltpu.VMEM((B, 1), jnp.float32)],           # running sum-exp
        compiler_params=pltpu.CompilerParams(
            dimension_semantics=("parallel", "arbitrary"),
            vmem_limit_bytes=vmem_limit),
    )(x_stack, w_t, b_tiled)


# ----------------------------------------------------------------------------
# No-exit path: RMSNorm fused into the bias-free lm_head matmul.
# Normalization is B*H of VPU work per tile, fully hidden under the weight DMA.
# ----------------------------------------------------------------------------
def _rmsnorm_lmhead_kernel(x_ref, g_ref, w_ref, o_ref, *, eps):
    x = x_ref[...].astype(jnp.float32)
    var = jnp.mean(x * x, axis=-1, keepdims=True)
    xn = (x * lax.rsqrt(var + eps) * g_ref[...]).astype(w_ref.dtype)
    o_ref[...] = jnp.dot(xn, w_ref[...], preferred_element_type=jnp.float32)


def rmsnorm_lm_head(x, gamma, w_t, *, tile_v, V_pad, vmem_limit, eps=1e-5):
    """x [B,H] f32, gamma [1,H] f32, w_t [H,V_pad] bf16 -> logits [B,V_pad] f32."""
    B, H = x.shape
    return pl.pallas_call(
        functools.partial(_rmsnorm_lmhead_kernel, eps=eps),
        out_shape=jax.ShapeDtypeStruct((B, V_pad), jnp.float32),
        grid=(V_pad // tile_v,),
        in_specs=[pl.BlockSpec((B, H), lambda v: (0, 0)),
                  pl.BlockSpec((1, H), lambda v: (0, 0)),
                  pl.BlockSpec((H, tile_v), lambda v: (0, v))],
        out_specs=pl.BlockSpec((B, tile_v), lambda v: (0, v)),
        compiler_params=pltpu.CompilerParams(
            dimension_semantics=("parallel",),
            vmem_limit_bytes=vmem_limit),
    )(x, gamma, w_t)


# ----------------------------------------------------------------------------
# One-time parameter preparation (layout + padding; analogous to loading the
# fp16 PyTorch weights): transpose to [*, H, V], pad vocab to a tile multiple.
# ----------------------------------------------------------------------------
def prepare_params(clf_w, clf_b, lm_w, *, tile_v=None):
    """clf_w [L,V,H], clf_b [L,V], lm_w [V,H] -> kernel-ready param dict."""
    L, V, H = clf_w.shape
    vmem_limit, weight_budget = _vmem_config()
    if tile_v is None:
        tile_v = _pick_tile_v(V, H, 2, weight_budget)
    V_pad = _round_up(V, tile_v)
    pad = V_pad - V

    clf_w_t = jnp.pad(jnp.swapaxes(clf_w.astype(jnp.bfloat16), 1, 2),
                      ((0, 0), (0, 0), (0, pad)))                    # [L,H,Vp]
    clf_b_p = jnp.pad(clf_b.astype(jnp.float32), ((0, 0), (0, pad)),
                      constant_values=_NEG).reshape(L, V_pad // tile_v, tile_v)
    lm_w_t = jnp.pad(jnp.swapaxes(lm_w.astype(jnp.bfloat16), 0, 1),
                     ((0, 0), (0, pad)))                             # [H,Vp]
    return dict(clf_w_t=clf_w_t, clf_b=clf_b_p, lm_w_t=lm_w_t,
                tile_v=int(tile_v), V=int(V), V_pad=int(V_pad),
                vmem_limit=int(vmem_limit))


# ----------------------------------------------------------------------------
# EarlyExitModelWrapper.forward equivalent (requires B == 1, like the
# reference's scalar `if max_prob >= threshold`).
# ----------------------------------------------------------------------------
def early_exit_forward(hidden_states, params, norm_gamma,
                       confidence_threshold=0.9, eps=1e-5):
    """hidden_states: list of (num_layers+1) arrays [B,S,H] (embeddings + each
    decoder layer output, as HF returns).  Returns dict(logits, exit_layer,
    hidden_states) matching the PyTorch module, with ONE device->host sync."""
    V = params["V"]
    L = params["clf_w_t"].shape[0]
    x_stack = jnp.stack([h[:, -1, :] for h in hidden_states[1:L + 1]],
                        axis=0).astype(params["clf_w_t"].dtype)       # [L,B,H]

    max_probs, logits_all = early_exit_max_probs_and_logits(
        x_stack, params["clf_w_t"], params["clf_b"],
        tile_v=params["tile_v"], V_pad=params["V_pad"],
        vmem_limit=params["vmem_limit"])
    mp_host = jax.device_get(max_probs)[:, 0, 0]                      # one sync

    # TODO(synk): if exits are typically early, process layers in small chunks
    # (one readback per chunk) to skip streaming the remaining layers' weights.
    for layer_idx in range(L):
        if float(mp_host[layer_idx]) >= confidence_threshold:
            return {"logits": logits_all[layer_idx, :, :V],
                    "exit_layer": layer_idx + 1,
                    "hidden_states": hidden_states[layer_idx + 1]}

    final_h = hidden_states[-1]
    final_logits = rmsnorm_lm_head(
        final_h[:, -1, :].astype(jnp.float32),
        norm_gamma.reshape(1, -1).astype(jnp.float32),
        params["lm_w_t"], tile_v=params["tile_v"], V_pad=params["V_pad"],
        vmem_limit=params["vmem_limit"], eps=eps)
    return {"logits": final_logits[:, :V],
            "exit_layer": len(hidden_states) - 1,
            "hidden_states": final_h}


# TODO(synk): the wrapped causal LM (TinyLlama) itself is not translatable into
# a Pallas kernel; its output_hidden_states are synthesized below.

if __name__ == "__main__":
    key = jax.random.PRNGKey(0)

    # Small shapes consistent with the module's forward.  V is deliberately NOT
    # a multiple of the forced test tile so the padded-tail path is exercised.
    B, S, H, V = 1, 8, 64, 640
    NUM_LAYERS = 4
    EPS = 1e-5
    TILE_V = 256                       # force multi-tile grid + padded tail

    keys = jax.random.split(key, 3 * NUM_LAYERS + 2)
    kidx = iter(range(len(keys)))

    # Synthetic hidden_states tuple: embeddings + NUM_LAYERS layer outputs.
    hidden_states = [
        jax.random.normal(keys[next(kidx)], (B, S, H), dtype=jnp.float32)
        for _ in range(NUM_LAYERS + 1)
    ]

    clf_w = jnp.stack([
        jax.random.normal(keys[next(kidx)], (V, H), dtype=jnp.float32)
        * (1.0 / jnp.sqrt(H)) for _ in range(NUM_LAYERS)])           # [L,V,H]
    clf_b = jnp.stack([
        jax.random.normal(keys[next(kidx)], (V,), dtype=jnp.float32) * 0.01
        for _ in range(NUM_LAYERS)])                                 # [L,V]
    lm_head_w = (jax.random.normal(keys[next(kidx)], (V, H), dtype=jnp.float32)
                 * (1.0 / jnp.sqrt(H)))                              # [V,H]
    norm_gamma = jnp.ones((H,), dtype=jnp.float32)

    params = prepare_params(clf_w, clf_b, lm_head_w, tile_v=TILE_V)

    # Plain-JAX reference with the SAME bf16-quantized weights/activations.
    clf_w_q = clf_w.astype(jnp.bfloat16).astype(jnp.float32)
    lm_w_q = lm_head_w.astype(jnp.bfloat16).astype(jnp.float32)

    def ref_forward(threshold):
        for i in range(NUM_LAYERS):
            x = hidden_states[i + 1][:, -1, :].astype(jnp.bfloat16).astype(jnp.float32)
            logits = x @ clf_w_q[i].T + clf_b[i]
            probs = jax.nn.softmax(logits, axis=-1)
            if float(probs.max(axis=-1)[0]) >= threshold:
                return logits, i + 1
        x = hidden_states[-1][:, -1, :]
        var = jnp.mean(x * x, axis=-1, keepdims=True)
        xn = (x * lax.rsqrt(var + EPS) * norm_gamma
              ).astype(jnp.bfloat16).astype(jnp.float32)
        return xn @ lm_w_q.T, NUM_LAYERS

    # Exercise both paths: high threshold -> no early exit (fused RMSNorm +
    # lm_head path); very low threshold -> early exit at layer 1 (logits come
    # straight from the fused kernel's second output).
    for thresh in (0.9, 0.002):
        out = early_exit_forward(hidden_states, params, norm_gamma,
                                 confidence_threshold=thresh, eps=EPS)
        jax.block_until_ready(out["logits"])
        jax.block_until_ready(out["hidden_states"])

        ref_logits, ref_exit = ref_forward(thresh)
        assert out["exit_layer"] == ref_exit, (thresh, out["exit_layer"], ref_exit)
        assert jnp.allclose(out["logits"], ref_logits, atol=2e-2, rtol=2e-2), (
            thresh, float(jnp.max(jnp.abs(out["logits"] - ref_logits))))

    print("KERNEL_OK")
</pallas_src>

<mosaic_0001>
module attributes {stable_mosaic.version = 11 : i64} {
  func.func @_fused_maxprob_logits_kernel(%arg0: i32, %arg1: i32, %arg2: memref<1x1x64xbf16, #tpu.memory_space<vmem>>, %arg3: memref<1x64x256xbf16, #tpu.memory_space<vmem>>, %arg4: memref<1x3x256xf32, #tpu.memory_space<vmem>>, %arg5: memref<1x1x1xf32, #tpu.memory_space<vmem>>, %arg6: memref<1x1x256xf32, #tpu.memory_space<vmem>>, %arg7: memref<1x1xf32, #tpu.memory_space<vmem>>, %arg8: memref<1x1xf32, #tpu.memory_space<vmem>>) attributes {dimension_semantics = [#tpu.dimension_semantics<parallel>, #tpu.dimension_semantics<arbitrary>], iteration_bounds = array<i64: 4, 3>, scalar_prefetch = 0 : i64, scratch_operands = 2 : i64, tpu.core_type = #tpu.core_type<tc>, window_params = [{transform_indices = @transform_0, window_bounds = array<i64: 1, 1, 64>}, {transform_indices = @transform_1, window_bounds = array<i64: 1, 64, 256>}, {transform_indices = @transform_2, window_bounds = array<i64: 1, 3, 256>}, {transform_indices = @transform_3, window_bounds = array<i64: 1, 1, 1>}, {transform_indices = @transform_4, window_bounds = array<i64: 1, 1, 256>}]} {
    %c0_i32 = arith.constant 0 : i32
    %0 = arith.cmpi eq, %arg1, %c0_i32 : i32
    %1 = arith.extui %0 : i1 to i32
    %c0_i32_0 = arith.constant 0 : i32
    %2 = arith.cmpi ne, %1, %c0_i32_0 : i32
    scf.if %2 {
      %cst_22 = arith.constant 0xFF800000 : f32
      %34 = vector.broadcast %cst_22 : f32 to vector<1x1xf32>
      %c0_23 = arith.constant 0 : index
      %c0_24 = arith.constant 0 : index
      %35 = vector.load %arg7[%c0_23, %c0_24] : memref<1x1xf32, #tpu.memory_space<vmem>>, vector<1x1xf32>
      tpu.vector_store %arg7[%c0_23, %c0_24], %34 {strides = array<i32>} : memref<1x1xf32, #tpu.memory_space<vmem>>, vector<1x1xf32>,
      %cst_25 = arith.constant 0.000000e+00 : f32
      %36 = vector.broadcast %cst_25 : f32 to vector<1x1xf32>
      %c0_26 = arith.constant 0 : index
      %c0_27 = arith.constant 0 : index
      %37 = vector.load %arg8[%c0_26, %c0_27] : memref<1x1xf32, #tpu.memory_space<vmem>>, vector<1x1xf32>
      tpu.vector_store %arg8[%c0_26, %c0_27], %36 {strides = array<i32>} : memref<1x1xf32, #tpu.memory_space<vmem>>, vector<1x1xf32>,
    } else {
    }
    %c0 = arith.constant 0 : index
    %3 = arith.index_cast %arg1 : i32 to index
    %c0_1 = arith.constant 0 : index
    %4 = vector.load %arg4[%c0, %3, %c0_1] : memref<1x3x256xf32, #tpu.memory_space<vmem>>, vector<1x1x256xf32>
    %5 = vector.shape_cast %4 : vector<1x1x256xf32> to vector<1x256xf32>
    %c0_2 = arith.constant 0 : index
    %c0_3 = arith.constant 0 : index
    %c0_4 = arith.constant 0 : index
    %6 = vector.load %arg2[%c0_2, %c0_3, %c0_4] : memref<1x1x64xbf16, #tpu.memory_space<vmem>>, vector<1x1x64xbf16>
    %7 = vector.shape_cast %6 : vector<1x1x64xbf16> to vector<1x64xbf16>
    %c0_5 = arith.constant 0 : index
    %c0_6 = arith.constant 0 : index
    %c0_7 = arith.constant 0 : index
    %8 = vector.load %arg3[%c0_5, %c0_6, %c0_7] : memref<1x64x256xbf16, #tpu.memory_space<vmem>>, vector<1x64x256xbf16>
    %9 = vector.shape_cast %8 : vector<1x64x256xbf16> to vector<64x256xbf16>
    %cst = arith.constant dense<0.000000e+00> : vector<1x256xf32>
    %10 = tpu.matmul %7, %9, %cst {dimension_numbers = #tpu.dot_dimension_numbers<[1], [0], [0], [1], [0, 0, 1, 1], [], []>} : vector<1x64xbf16>, vector<64x256xbf16>, vector<1x256xf32> -> vector<1x256xf32>
    %11 = arith.addf %10, %5 : vector<1x256xf32>
    %c0_8 = arith.constant 0 : index
    %c0_9 = arith.constant 0 : index
    %c0_10 = arith.constant 0 : index
    %12 = vector.load %arg6[%c0_8, %c0_9, %c0_10] : memref<1x1x256xf32, #tpu.memory_space<vmem>>, vector<1x1x256xf32>
    %13 = vector.shape_cast %12 : vector<1x1x256xf32> to vector<1x256xf32>
    %14 = vector.shape_cast %11 : vector<1x256xf32> to vector<1x1x256xf32>
    tpu.vector_store %arg6[%c0_8, %c0_9, %c0_10], %14 {strides = array<i32>} : memref<1x1x256xf32, #tpu.memory_space<vmem>>, vector<1x1x256xf32>,
    %c0_11 = arith.constant 0 : index
    %c0_12 = arith.constant 0 : index
    %15 = vector.load %arg7[%c0_11, %c0_12] : memref<1x1xf32, #tpu.memory_space<vmem>>, vector<1x1xf32>
    %cst_13 = arith.constant dense<0xFF800000> : vector<1xf32>
    %16 = vector.multi_reduction <maximumf>, %11, %cst_13 [1] : vector<1x256xf32> to vector<1xf32>
    %17 = vector.shape_cast %16 : vector<1xf32> to vector<1x1xf32>
    %18 = arith.maximumf %15, %17 : vector<1x1xf32>
    %c0_14 = arith.constant 0 : index
    %c0_15 = arith.constant 0 : index
    %19 = vector.load %arg8[%c0_14, %c0_15] : memref<1x1xf32, #tpu.memory_space<vmem>>, vector<1x1xf32>
    %20 = arith.subf %15, %18 : vector<1x1xf32>
    %21 = math.exp %20 : vector<1x1xf32>
    %22 = arith.mulf %19, %21 : vector<1x1xf32>
    %23 = vector.broadcast %18 : vector<1x1xf32> to vector<1x256xf32>
    %24 = arith.subf %11, %23 : vector<1x256xf32>
    %25 = math.exp %24 : vector<1x256xf32>
    %cst_16 = arith.constant dense<0.000000e+00> : vector<1xf32>
    %26 = vector.multi_reduction <add>, %25, %cst_16 [1] : vector<1x256xf32> to vector<1xf32>
    %27 = vector.shape_cast %26 : vector<1xf32> to vector<1x1xf32>
    %28 = arith.addf %22, %27 : vector<1x1xf32>
    %c0_17 = arith.constant 0 : index
    %c0_18 = arith.constant 0 : index
    %29 = vector.load %arg8[%c0_17, %c0_18] : memref<1x1xf32, #tpu.memory_space<vmem>>, vector<1x1xf32>
    tpu.vector_store %arg8[%c0_17, %c0_18], %28 {strides = array<i32>} : memref<1x1xf32, #tpu.memory_space<vmem>>, vector<1x1xf32>,
    %c0_19 = arith.constant 0 : index
    %c0_20 = arith.constant 0 : index
    %30 = vector.load %arg7[%c0_19, %c0_20] : memref<1x1xf32, #tpu.memory_space<vmem>>, vector<1x1xf32>
    tpu.vector_store %arg7[%c0_19, %c0_20], %18 {strides = array<i32>} : memref<1x1xf32, #tpu.memory_space<vmem>>, vector<1x1xf32>,
    %c2_i32 = arith.constant 2 : i32
    %31 = arith.cmpi eq, %arg1, %c2_i32 : i32
    %32 = arith.extui %31 : i1 to i32
    %c0_i32_21 = arith.constant 0 : i32
    %33 = arith.cmpi ne, %32, %c0_i32_21 : i32
    scf.if %33 {
      %c0_22 = arith.constant 0 : index
      %c0_23 = arith.constant 0 : index
      %34 = vector.load %arg8[%c0_22, %c0_23] : memref<1x1xf32, #tpu.memory_space<vmem>>, vector<1x1xf32>
      %cst_24 = arith.constant 1.000000e+00 : f32
      %35 = vector.broadcast %cst_24 : f32 to vector<1x1xf32>
      %36 = arith.divf %35, %34 : vector<1x1xf32>
      %c0_25 = arith.constant 0 : index
      %c0_26 = arith.constant 0 : index
      %c0_27 = arith.constant 0 : index
      %37 = vector.load %arg5[%c0_25, %c0_26, %c0_27] : memref<1x1x1xf32, #tpu.memory_space<vmem>>, vector<1x1x1xf32>
      %38 = vector.shape_cast %37 : vector<1x1x1xf32> to vector<1x1xf32>
      %39 = vector.shape_cast %36 : vector<1x1xf32> to vector<1x1x1xf32>
      tpu.vector_store %arg5[%c0_25, %c0_26, %c0_27], %39 {strides = array<i32>} : memref<1x1x1xf32, #tpu.memory_space<vmem>>, vector<1x1x1xf32>,
    } else {
    }
    return
  }
  func.func @transform_0(%arg0: i32, %arg1: i32) -> (i32, i32, i32) {
    %c0_i32 = arith.constant 0 : i32
    %c0_i32_0 = arith.constant 0 : i32
    %c0_i32_1 = arith.constant 0 : i32
    return %arg0, %c0_i32, %c0_i32_0 : i32, i32, i32
  }
  func.func @transform_1(%arg0: i32, %arg1: i32) -> (i32, i32, i32) {
    %c0_i32 = arith.constant 0 : i32
    %c0_i32_0 = arith.constant 0 : i32
    return %arg0, %c0_i32, %arg1 : i32, i32, i32
  }
  func.func @transform_2(%arg0: i32, %arg1: i32) -> (i32, i32, i32) {
    %c0_i32 = arith.constant 0 : i32
    %c0_i32_0 = arith.constant 0 : i32
    %c0_i32_1 = arith.constant 0 : i32
    return %arg0, %c0_i32, %c0_i32_0 : i32, i32, i32
  }
  func.func @transform_3(%arg0: i32, %arg1: i32) -> (i32, i32, i32) {
    %c0_i32 = arith.constant 0 : i32
    %c0_i32_0 = arith.constant 0 : i32
    %c0_i32_1 = arith.constant 0 : i32
    return %arg0, %c0_i32, %c0_i32_0 : i32, i32, i32
  }
  func.func @transform_4(%arg0: i32, %arg1: i32) -> (i32, i32, i32) {
    %c0_i32 = arith.constant 0 : i32
    %c0_i32_0 = arith.constant 0 : i32
    return %arg0, %c0_i32, %arg1 : i32, i32, i32
  }
}

</mosaic_0001>

<bundles_post_ra>
// kernel: tpu_custom_call.1
= control target key start
LH: loop header
LB: loop body
LE: loop exit
PB: predicated region body
PF: predicated region fallthrough
CT: control target
= control target key end

     0   :  { %s1169_s0 = inlined_call_operand.vmem [shape: bf16[4,1,64], index: 0, kind: input, shape index: {}]   ;;  %s1170_s1 = inlined_call_operand.hbm [shape: bf16[4,64,768], index: 1, kind: input, shape index: {}]   ;;  %s1171_s2 = inlined_call_operand.vmem [shape: f32[4,3,256], index: 2, kind: input, shape index: {}]   ;;  %s1172_s3 = inlined_call_operand.vmem [shape: f32[4,1,1], index: 3, kind: output, shape index: {0}]   ;;  %s1173_s4 = inlined_call_operand.hbm [shape: f32[4,1,768], index: 4, kind: output, shape index: {1}]  }
   0x1   :  { %1176 = sst [smem:[#allocation11_spill]] %s1170_s1 }
   0x2   :  { %10 = vsyncpa [#allocation5], 0 }
   0x3   :  { %12 = vsyncpa [#allocation5 + $0x1], 0 }
   0x4   :  { %13 = vsyncpa [#allocation6], 0 }
   0x5   :  { %15 = vsyncpa [#allocation6 + $0x1], 0  ;;  %s926_s15 = smov 0   ;;  %s928_s16 = smov 0  }
   0x6   :  { %s930_s17 = smov 0   ;;  %s932_s18 = smov 0  }
   0x7   :  { %s934_s19 = smov 0   ;;  %s936_s20 = smov 0  }
   0x8   :  { %s938_s21 = smov 0   ;;  %s940_s22 = smov 0  }
   0x9 LB: > { %s622_s23 = sadd.s32 4294967295, %s890_s22   ;;  %s623_s24 = sadd.s32 4294967294, %s890_s22   ;;  %s890_s22 = sphi %s940_s22, %s21_s22   ;;  %s886_s21 = sphi %s938_s21, %s1194_s21   ;;  %s882_s20 = sphi %s936_s20, %s1193_s20   ;;  %s878_s19 = sphi %s934_s19, %s1192_s19   ;;  %s874_s18 = sphi %s932_s18, %s1191_s18   ;;  %s870_s17 = sphi %s930_s17, %s1190_s17   ;;  %s866_s16 = sphi %s928_s16, %s1189_s16   ;;  %s862_s15 = sphi %s926_s15, %s1188_s15  }
   0xa   : > { %s30_s25 = sadd.s32 1, %s882_s20  ;;  %s33_s26 = sadd.s32 1, %s886_s21 }
   0xb   : > { %p31_p0 = scmp.ge.s32.totalorder %s30_s25, 3  ;;  %s68_s27 = sadd.s32 1, %s870_s17 }
   0xc   : > { %p75_p1 = scmp.ne.s32.totalorder %s870_s17, %s866_s16  ;;  %p76_p2 = scmp.eq.s32.totalorder %s890_s22, 0 }
   0xd   : > { %s1196_s25 = smov (%p31_p0, %s30_s25), 0  ;;  %s1198_s26 = smov (!%p31_p0, %s33_s26), %s886_s21 }
   0xe   : > { %s64_s28 = ssub.s32 %s882_s20, %s1196_s25  ;;  %p979_p3 = por %p76_p2, %p75_p1 }
   0xf   : > { %p35_p4 = scmp.ge.s32.totalorder %s1198_s26, 4  ;;  %p81_p5 = scmp.ne.s32.totalorder %s866_s16, %s862_s15 }
  0x10   : > { %p82_p6 = scmp.eq.s32.totalorder %s622_s23, 0  ;;  %p159_p7 = scmp.eq.s32.totalorder %s622_s23, 11 }
  0x11   : > { %s1200_s26 = smov (%p35_p4, %s1198_s26), 0  ;;  %p165_p10 = scmp.eq.s32.totalorder %s623_s24, 11 }
  0x12   : > { %1178 = sst [smem:[#allocation10_spill]] %s1200_s26  ;;  %p987_p8 = por %p82_p6, %p81_p5 }
  0x13   : > { %p991_p9 = por %p159_p7, %p75_p1  ;;  %s63_s6 = ssub.s32 %s886_s21, %s1200_s26 }
  0x14   : > { %s65_s7 = sor.u32 %s64_s28, %s63_s6  ;;  %p997_p12 = por %p165_p10, %p81_p5 }
  0x15   : > { %s1180_s5 = scalar_select %p991_p9, 1, 0 }
  0x16   : > { %p66_p11 = scmp.eq.s32.totalorder %s65_s7, 0  ;;  %p668_p13 = scmp.lt.s32.totalorder %s890_s22, 12 }
  0x17   : > { %s1181_s8 = scalar_select %p997_p12, 1, 0 }
  0x18   : > { %s191_s9 = sand.u32 1, %s870_s17   ;;  %s627_s12 = sshll.u32 %s882_s20, 1 }
  0x19   : > { %s1004_s10 = scalar_select %p66_p11, %s870_s17, %s68_s27  }
  0x1a   : > { %s626_s11 = sshll.u32 %s191_s9, 6  ;;  %s654_s13 = smul.u32 48, %s886_s21 }
  0x1b   : > { %s195_s14 = scalar_lea.vmem [#allocation4], %s626_s11  ;;  %p1012_p0 = pnand %p668_p13, %p979_p3 }
  0x1c   : > { %s204_s23 = sshll.u32 %s195_s14, 4  ;;  %s201_s28 = sadd.s32 %s654_s13, %s627_s12  ;;  %s1008_s23 = int_to_ptr.vmem [resolvable:$true] %s204_s23 }
  0x1d   : > { %s628_s6 = sshll.u32 %s201_s28, 6  ;;  %s1183_s1 = sld [smem:[#allocation11_spill]] }
  0x1e   : > { %s1022_s11 = scalar_lea.sflag [#allocation5], %s191_s9  ;;  %p764_p3 = pneg %p1012_p0 }
  0x23   : > { %s1019_s27 = scalar_lea.hbm %s1183_s1, %s628_s6  ;;  %s767_s26 = scalar_lea.hbm %s1183_s1, 12288 }
  0x24   : > { %s762_s29 = scalar_lea.hbm %s1019_s27, 1024  ;;  %p768_p6 = scmp.lt.u32.totalorder %s1019_s27, %s1183_s1 }
  0x25   : > { %p763_p2 = scmp.ne.s32.totalorder %s1019_s27, %s762_s29  ;;  %p769_p7 = scmp.lt.u32.totalorder %s767_s26, %s762_s29 }
  0x26   : > { %p771_p11 = scmp.lt.u32.totalorder %s762_s29, %s1019_s27 }
  0x27   : > { %p765_p4 = pnand %p764_p3, %p763_p2  ;;  %p770_p10 = por %p769_p7, %p768_p6 }
  0x29   : > { %p766_p5 = pneg %p765_p4  ;;  %p772_p13 = por %p771_p11, %p770_p10 }
  0x2b   : > { %p773_p1 = pnand %p772_p13, %p766_p5 }
  0x2d   : > { %776 = shalt.err (!%p773_p1)
}
  0x2e   : > { %s777_s9 = scalar_lea.vmem %s1008_s23, 1024  ;;  %s892_s6 = smov [#allocation4]  }
  0x2f   : > { %p778_p2 = scmp.ne.s32.totalorder %s1008_s23, %s777_s9  ;;  %s782_s7 = sshll.u32 %s892_s6, 4  ;;  %s783_s7 = int_to_ptr.vmem [resolvable:$false] %s782_s7 }
  0x30   : > { %s784_s12 = scalar_lea.vmem %s783_s7, 2048  ;;  %p785_p9 = scmp.lt.s32.totalorder %s1008_s23, %s783_s7 }
  0x31   : > { %p780_p4 = pnand %p778_p2, %p764_p3  ;;  %p786_p6 = scmp.lt.s32.totalorder %s784_s12, %s777_s9 }
  0x33   : > { %p781_p12 = pneg %p780_p4  ;;  %p787_p7 = por %p786_p6, %p785_p9 }
  0x35   : > { %p788_p10 = pnand %p787_p7, %p781_p12 }
  0x37   : > { %791 = shalt.err (!%p788_p10)
}
  0x38   : > { %s893_s29 = smov 384   ;;  %s894_s13 = smov 128  }
  0x39   : > { %s895_s26 = smov 8   ;;  %p220_p1 = scmp.lt.s32.totalorder %s890_s22, 13 }
  0x3a   : > { %663 = dma.hbm_to_vmem [thread:$0]  (!%p1012_p0), %s1019_s27, 1024, %s1008_s23, %s1022_s11, %s893_s29, %s894_s13, %s895_s26  }
  0x3b   : > { %p1184_p3 = scmp.ge.s32.totalorder %s890_s22, 1 }
  0x3d   : > { %p221_p5 = pnand %p1184_p3, %p220_p1 }
  0x3e   : > { %s1054_s14 = sand.u32 (!%p221_p5), 1, %s866_s16  }
  0x3f   : > { %224 = sbr.rel (%p221_p5) target bundleno = 801 (0x321), region = 32  ;;  %s630_s28 = sshll.u32 (!%p221_p5), %s1054_s14, 6 }
  0x40   : > { %s227_s9 = scalar_lea.sflag (!%p221_p5), [#allocation5], %s1054_s14  ;;  %s1058_s6 = scalar_lea.vmem (!%p221_p5), [#allocation4], %s630_s28 }
  0x46   : > { %853 = dma.done.wait (%p987_p8), %s227_s9, 1024  }
  0x47   : > { %855 = vsyncadd (%p987_p8), %s227_s9, 4294966272  ;;  %s631_s23 = sshll.u32 %s1054_s14, 1  ;;  %p266_p9 = scmp.lt.s32.totalorder %s878_s19, 3 }
  0x48   : > { %s1083_s1 = scalar_lea.vmem [#allocation7], %s631_s23  ;;  %p634_p8 = scmp.ne.s32.totalorder %s874_s18, 0 }
  0x49   : > { %s1067_s24 = scalar_select %p266_p9, %s878_s19, 3 }
  0x4a   : > { %283 = sbr.rel (%p634_p8) target bundleno = 81 (0x51), region = 40  ;;  %vm284_vm0 = vcmask (!%p634_p8), 0   ;;  %v896_v0 = vmov (!%p634_p8), -inf   ;;  %v897_v1 = vmov (!%p634_p8), 0.0  }
  0x4b   : > { %s268_s7 = scalar_lea.vmem %s1169_s0, %s1067_s24  ;;  %s652_s12 = sshll.u32 %s1067_s24, 3  ;;  %285 = vst.msk [vmem:[#allocation2] sm:$0x1] (!%p634_p8), %vm284_vm0, %v896_v0  ;;  %286 = vst.msk [vmem:[#allocation3] sm:$0x1] (!%p634_p8), %vm284_vm0, %v897_v1 }
  0x4c   : > { %s1077_s30 = scalar_lea.vmem %s1171_s2, %s652_s12  ;;  %s277_s9 = scalar_lea.vmem %s1172_s3, %s1067_s24 }
  0x51 PF: > { %v742_v2 = vld [vmem:[%s1058_s6 + $0x4] ss:$8 sps:$4 sm:$0xff]   ;;  %v744_v3 = vld [vmem:[%s1058_s6] ss:$8 sps:$4 sm:$0xff]   ;;  %v898_v4 = vmov 0   ;;  %vm356_vm1 = vcmask 523264   ;;  %v346_v12 = vlaneseq }
  0x52   : > { %392 = vmatprep.mubr.bf16.mxu0 %v898_v4  ;;  %741 = vset.pattern.permute.xlu0 %v898_v4  ;;  %v745_v5 = vld [vmem:[%s1058_s6 + $0x14] ss:$8 sps:$4 sm:$0xff]   ;;  %v747_v6 = vld [vmem:[%s1058_s6 + $0x10] ss:$8 sps:$4 sm:$0xff]   ;;  %v748_v7 = vld [vmem:[%s1058_s6 + $0x24] ss:$8 sps:$4 sm:$0xff]  }
  0x53   : > { %360 = vmatprep.subr.bf16.mxu0 %v742_v2  ;;  %v750_v8 = vld [vmem:[%s1058_s6 + $0x20] ss:$8 sps:$4 sm:$0xff]   ;;  %v751_v9 = vld [vmem:[%s1058_s6 + $0x34] ss:$8 sps:$4 sm:$0xff]   ;;  %v753_v10 = vld [vmem:[%s1058_s6 + $0x30] ss:$8 sps:$4 sm:$0xff]  }
  0x54   : > { %361 = vmatpush1.bf16.msra.mxu0 %v744_v3  ;;  %v296_v11 = vld [vmem:[%s268_s7] sm:$0x1]  ;;  %s287_s11 = sshra.s32 %s874_s18, 2  ;;  %s290_s12 = sand.u32 3, %s874_s18  ;;  %v347_v13 = vshrl.u32 %v346_v12, 7  ;;  %vm425_vm2 = vcmask 1040384  }
  0x55   : > { %362 = vmatprep.subr.bf16.mxu0 %v745_v5  ;;  %s653_s29 = sshll.u32 %s287_s11, 3  ;;  %v899_v17 = vmov 1966171168   ;;  %vm421_vm3 = vcmp.lt.s32.totalorder %v346_v12, 256  ;;  %v424_v35 = vld [vmem:[#allocation2] sm:$0x1] }
  0x56   : > { %s293_s13 = sadd.s32 %s653_s29, %s290_s12  ;;  %v348_v14 = vsub.s32 0, %v347_v13  ;;  %v352_v16 = vsub.s32 1, %v347_v13  ;;  %v405_v18 = vunpack.c.l.s4 %v899_v17  ;;  %vm458_vm4 = vcmask 0   ;;  %v432_v52 = vld [vmem:[#allocation3] sm:$0x1]  ;;  %p646_p12 = scmp.ne.s32.totalorder %s874_s18, 2 }
  0x57   : > { %s294_s26 = scalar_lea.vmem %s1077_s30, %s293_s13 }
  0x58   : > { %363 = vmatpush1.bf16.msra.mxu0 %v747_v6  ;;  %v295_v15 = vld [vmem:[%s294_s26] ss:$4 sm:$0x3]  ;;  %v406_v21 = vunpack.c.0.s8 %v405_v18 }
  0x59   : > { %364 = vmatprep.subr.bf16.mxu0 %v748_v7  ;;  %v349_v19 = vrot.slane %v295_v15, %v348_v14  ;;  %v353_v20 = vrot.slane %v295_v15, %v352_v16 }
  0x5a   : > { %v409_v26 = vsub.s32 %v406_v21, %v347_v13 }
  0x5c   : > { %365 = vmatpush1.bf16.msra.mxu0 %v750_v8 }
  0x5d   : > { %366 = vmatprep.subr.bf16.mxu0 %v751_v9 }
  0x60   : > { %367 = vmatpush1.bf16.msra.mxu0 %v753_v10 }
  0x63   : > { %645 = vmatmul.mubr.msk.bf16.vlgmr.msra.gmra.mrb[0].mxu0 %vm356_vm1, %v296_v11 }
 0x136   : > { %v394_v22 = vpop.f32.mrb[0].mxu0 }
 0x137   : > { %v395_v23 = vadd.f32 %v394_v22, %v349_v19  ;;  %v396_v24 = vpop.f32.mrb[1].mxu0 }
 0x138   : > { %v397_v25 = vadd.f32 %v396_v24, %v353_v20  ;;  %v398_v27 = vpop.f32.mrb[2].mxu0 }
 0x139   : > { %v399_v28 = vpop.f32.mrb[3].mxu0  ;;  %v426_v29 = vsel %vm425_vm2, %v395_v23, -inf }
 0x13a   : > { %v403_v30 = vcombine.low %v395_v23, %v397_v25  ;;  %v427_v31 = vsel %vm425_vm2, %v397_v25, -inf }
 0x13b   : > { %v428_v32 = vmax.f32 %v426_v29, %v427_v31 }
 0x13c   : > { %v410_v33 = vrot.slane %v403_v30, %v409_v26 }
 0x13d   : > { %429 = vmax.xlane.f32.xlu0 %v428_v32 }
 0x13e   : > { %v417_v34 = vrot.slane %v410_v33, %v409_v26 }
 0x140   : > { %423 = vst.msk [vmem:[%s1083_s1] sm:$0x3] %vm421_vm3, %v417_v34 }
 0x1ca   : > { %v430_v36 = vpop.xlane.xlu0 %429 }
 0x1cb   : > { %v431_v37 = vmax.f32 %v424_v35, %v430_v36 }
 0x1cd   : > { %v433_v38 = vsub.f32 %v424_v35, %v431_v37  ;;  %460 = vst.msk [vmem:[#allocation2] sm:$0x1] %vm458_vm4, %v431_v37  ;;  %439 = vperm.xlu0 %741, %v431_v37  }
 0x1cf   : > { %v434_v50 = vmul.f32 1.442695, %v433_v38 }
 0x24c   : > { %v440_v39 = vpop.permute.xlu0 %439 }
 0x24d   : > { %v445_v40 = vrot.slane %v440_v39, %v348_v14 }
 0x24f   : > { %v446_v41 = vsub.f32 %v395_v23, %v445_v40  ;;  %v447_v42 = vsub.f32 %v397_v25, %v445_v40 }
 0x251   : > { %v448_v43 = vmul.f32 1.442695, %v446_v41  ;;  %v450_v44 = vmul.f32 1.442695, %v447_v42 }
 0x253   : > { %754 = vpow2.f32 %v448_v43 }
 0x254   : > { %756 = vpow2.f32 %v450_v44 }
 0x255   : > { %758 = vpow2.f32 %v434_v50 }
 0x25d   : > { %v755_v45 = vpop.eup %754 }
 0x25e   : > { %v757_v46 = vpop.eup %756  ;;  %v452_v47 = vsel %vm425_vm2, %v755_v45, 0.0 }
 0x25f   : > { %v453_v48 = vsel %vm425_vm2, %v757_v46, 0.0  ;;  %v759_v51 = vpop.eup %758 }
 0x260   : > { %v454_v49 = vadd.f32 %v453_v48, %v452_v47  ;;  %v436_v53 = vmul.f32 %v759_v51, %v432_v52 }
 0x262   : > { %455 = vadd.xlane.f32.xlu1 %v454_v49 }
 0x2ec   : > { %464 = sbr.rel (%p646_p12) target bundleno = 774 (0x306), region = 44 }
 0x2ef   : > { %v456_v54 = vpop.xlane.xlu1 %455 }
 0x2f0   : > { %v457_v55 = vadd.f32 %v456_v54, %v436_v53 }
 0x2f2   : > { %459 = vst.msk [vmem:[#allocation3] sm:$0x1] %vm458_vm4, %v457_v55 }
 0x2f9   : > { %v465_v56 = vld [vmem:[#allocation3] sm:$0x1] }
 0x2fa   : > { %760 = vrcp.f32 %v465_v56 }
 0x304   : > { %v761_v57 = vpop.eup %760 }
 0x305   : > { %468 = vst.msk [vmem:[%s277_s9] sm:$0x1] %vm458_vm4, %v761_v57 }
 0x306 PF: > { %s648_s30 = sshll.u32 %s874_s18, 1  ;;  %s655_s28 = smul.u32 6, %s878_s19 }
 0x307   : > { %s492_s23 = sshll.u32 %s1083_s1, 4  ;;  %s473_s9 = scalar_lea.sflag [#allocation6], %s1054_s14  ;;  %s1119_s23 = int_to_ptr.vmem [resolvable:$true] %s492_s23 }
 0x308   : > { %s488_s27 = sadd.s32 %s655_s28, %s648_s30  ;;  %s792_s13 = scalar_lea.vmem %s1119_s23, 32 }
 0x309   : > { %s649_s11 = sshll.u32 %s488_s27, 4  ;;  %p793_p0 = scmp.ne.s32.totalorder %s1119_s23, %s792_s13 }
 0x30a   : > { %s490_s24 = scalar_lea.hbm %s1173_s4, %s649_s11  ;;  %p1185_p11 = scmp.ne.s32.totalorder %s1180_s5, 0 }
 0x30b   : > { %s900_s18 = smov [#allocation7]  }
 0x30c   : > { %p794_p13 = pnand %p793_p0, %p1185_p11  ;;  %s796_s19 = sshll.u32 %s900_s18, 4  ;;  %s797_s19 = int_to_ptr.vmem [resolvable:$false] %s796_s19 }
 0x30d   : > { %s798_s1 = scalar_lea.vmem %s797_s19, 64  ;;  %p799_p4 = scmp.lt.s32.totalorder %s1119_s23, %s797_s19 }
 0x30e   : > { %p795_p2 = pneg %p794_p13  ;;  %p800_p6 = scmp.lt.s32.totalorder %s798_s1, %s792_s13 }
 0x310   : > { %p801_p7 = por %p800_p6, %p799_p4 }
 0x312   : > { %p802_p10 = pnand %p801_p7, %p795_p2 }
 0x314   : > { %805 = shalt.err (!%p802_p10)
}
 0x315   : > { %s806_s26 = scalar_lea.hbm %s490_s24, 32  ;;  %s810_s7 = scalar_lea.hbm %s1173_s4, 384 }
 0x316   : > { %p807_p1 = scmp.ne.s32.totalorder %s490_s24, %s806_s26  ;;  %p811_p9 = scmp.lt.u32.totalorder %s490_s24, %s1173_s4 }
 0x317   : > { %p812_p8 = scmp.lt.u32.totalorder %s810_s7, %s806_s26  ;;  %p814_p0 = scmp.lt.u32.totalorder %s806_s26, %s490_s24 }
 0x318   : > { %p808_p3 = pnand %p807_p1, %p1185_p11 }
 0x319   : > { %p813_p12 = por %p812_p8, %p811_p9 }
 0x31a   : > { %p809_p5 = pneg %p808_p3 }
 0x31b   : > { %p815_p13 = por %p814_p0, %p813_p12 }
 0x31d   : > { %p816_p2 = pnand %p815_p13, %p809_p5 }
 0x31f   : > { %819 = shalt.err (!%p816_p2)
}
 0x320   : > { %658 = dma.vmem_to_hbm [thread:$0]  (%p1185_p11), %s1119_s23, 32, %s490_s24, %s473_s9  }
 0x321 PF: > { %p669_p4 = scmp.ge.s32.totalorder %s890_s22, 2  ;;  %s510_s27 = sand.u32 1, %s862_s15  }
 0x322   : > { %p1186_p6 = scmp.ne.s32.totalorder %s1181_s8, 0  ;;  %s511_s11 = scalar_lea.sflag [#allocation6], %s510_s27 }
 0x324   : > { %p665_p7 = pnand %p669_p4, %p1186_p6 }
 0x326   : > { %857 = dma.done.wait (!%p665_p7), %s511_s11, 32  }
 0x327   : > { %859 = vsyncadd (!%p665_p7), %s511_s11, 4294967264  ;;  %s21_s22 = sadd.s32 1, %s890_s22   ;;  %s1187_s5 = sld [smem:[#allocation10_spill]] }
 0x328   : > { %p18_p10 = scmp.ge.s32.totalorder %s21_s22, 14   ;;  %s1188_s15 = smov %s866_s16 }
 0x329   : > { %s1189_s16 = smov %s870_s17  ;;  %s1190_s17 = smov %s1004_s10 }
 0x32a   : > { %s1191_s18 = smov %s882_s20  ;;  %s1192_s19 = smov %s886_s21 }
 0x32b   : > { %s1193_s20 = smov %s1196_s25  ;;  %20 = sbr.rel (!%p18_p10) target bundleno = 9 (0x9), region = 104 }
 0x32d   : > { %s1194_s21 = smov %s1187_s5 }
 0x332   :  { %516 = vsyncpa [#allocation5], 1 }
 0x333   :  { %518 = vsyncpa [#allocation5 + $0x1], 1 }
 0x334   :  { %519 = vsyncpa [#allocation6], 1 }
 0x335   :  { %521 = vsyncpa [#allocation6 + $0x1], 1 }

</bundles_post_ra>
